<compile_context>
chip_gen: v5e
topology: v5e:2x2
jax: 0.10.0
libtpu: 0.0.40
codegen_flags: <defaults>
</compile_context>

<pallas_src>
import math

import jax
import jax.numpy as jnp
from jax.experimental import pallas as pl
from jax.experimental.pallas import tpu as pltpu

_LOG2 = math.log(2.0)
_LANE = 128
_HI = jax.lax.Precision.HIGHEST


def _shifted_softplus(x):
    # schnetpack shifted_softplus: softplus(x) - log(2). Note softplus(0)-log2 == 0,
    # so zero-padded lanes stay exactly zero through the whole encoder.
    return jax.nn.softplus(x) - _LOG2


def _round_up(x, m):
    return ((x + m - 1) // m) * m


# ----------------------------------------------------------------------------
# Kernel: per batch-tile, 3 MXU matmuls + 2 softplus activations.
# All feature dims are padded to a common lane width W (>=128).
# ----------------------------------------------------------------------------
def vae_fused_kernel(x_ref, w1_ref, w2_ref, wm_ref, bias_ref, out_ref):
    # Layer 1: Dense(F -> W) with Standardize + IndexSelect folded into w1/b1.
    h1 = _shifted_softplus(
        jnp.dot(x_ref[...], w1_ref[...], preferred_element_type=jnp.float32)
        + bias_ref[0:1, :])
    # Layer 2: Dense(W -> W) (original K -> K/2, zero-padded).
    h2 = _shifted_softplus(
        jnp.dot(h1, w2_ref[...], preferred_element_type=jnp.float32)
        + bias_ref[1:2, :])
    # Means head with standardize_cv folded in; lane-dense padded output.
    out_ref[...] = (
        jnp.dot(h2, wm_ref[...], preferred_element_type=jnp.float32)
        + bias_ref[2:3, :])


# ----------------------------------------------------------------------------
# Offline parameter fusion + lane padding (runs once in the wrapper).
# ----------------------------------------------------------------------------
def fuse_and_pad_params(params, lane=_LANE):
    (mean, std, sel, w1, b1, w2, b2, wm, bm, shift, scale) = params
    F, K = sel.shape
    K2 = w2.shape[1]
    n_cvs = wm.shape[1]

    # Fold (x - mean)/std and the one-hot index-select into layer 1.
    inv_std = 1.0 / std                                           # [1, F]
    sel_w1 = jnp.matmul(sel, w1, precision=_HI)                   # [F, K]
    w1_f = inv_std.reshape(F, 1) * sel_w1                         # [F, K]
    b1_f = b1 - jnp.matmul(mean * inv_std, sel_w1, precision=_HI)  # [1, K]

    # Fold standardize_cv (affine) into the means head.
    inv_scale = 1.0 / scale                                       # [1, n_cvs]
    wm_f = wm * inv_scale                                         # [K2, n_cvs]
    bm_f = (bm - shift) * inv_scale                               # [1, n_cvs]

    # Common padded lane width for all intermediates / output.
    W = max(_round_up(K, lane), _round_up(K2, lane), _round_up(n_cvs, lane))

    def pad2(a, rows, cols):
        return jnp.zeros((rows, cols), jnp.float32).at[:a.shape[0], :a.shape[1]].set(a)

    w1_p = pad2(w1_f, F, W)     # [F, W]
    w2_p = pad2(w2, W, W)       # [W, W]
    wm_p = pad2(wm_f, W, W)     # [W, W]

    # Pack the 3 bias rows into one contiguous buffer -> single DMA.
    bias = jnp.zeros((3, W), jnp.float32)
    bias = bias.at[0, :K].set(b1_f[0])
    bias = bias.at[1, :K2].set(b2[0])
    bias = bias.at[2, :n_cvs].set(bm_f[0])

    return w1_p, w2_p, wm_p, bias, n_cvs


# ----------------------------------------------------------------------------
# Wrapper: batch-tiled grid, lane-dense output, parallel batch axis.
# ----------------------------------------------------------------------------
def schnet_vae_forward(repre, params, *, tile_b=256):
    """repre: [B, n_atoms, n_rp] float32. Returns cvs: [B, n_CVs]."""
    B, A, R = repre.shape
    F = A * R
    x = repre.reshape(B, F).astype(jnp.float32)

    w1_p, w2_p, wm_p, bias, n_cvs = fuse_and_pad_params(params)
    W = w1_p.shape[1]

    # Pick a batch tile: multiple of 8 sublanes, capped at tile_b (default 256
    # keeps [tb, F] + [tb, W] f32 buffers x2 double-buffering well under the
    # 32 MiB default scoped VMEM limit on every chip generation).
    tb = min(tile_b, _round_up(B, 8))
    B_pad = _round_up(B, tb)
    if B_pad != B:
        x = jnp.zeros((B_pad, F), jnp.float32).at[:B].set(x)

    out = pl.pallas_call(
        vae_fused_kernel,
        out_shape=jax.ShapeDtypeStruct((B_pad, W), jnp.float32),
        grid=(B_pad // tb,),
        in_specs=[
            pl.BlockSpec((tb, F), lambda i: (i, 0)),   # activations: tiled over batch
            pl.BlockSpec((F, W), lambda i: (0, 0)),    # w1 (fused), resident
            pl.BlockSpec((W, W), lambda i: (0, 0)),    # w2, resident
            pl.BlockSpec((W, W), lambda i: (0, 0)),    # wm (fused), resident
            pl.BlockSpec((3, W), lambda i: (0, 0)),    # packed biases, resident
        ],
        out_specs=pl.BlockSpec((tb, W), lambda i: (i, 0)),
        compiler_params=pltpu.CompilerParams(
            dimension_semantics=("parallel",)),        # megacore-shard on v7x
    )(x, w1_p, w2_p, wm_p, bias)

    # Strip batch padding and the lane padding of the means head.
    return out[:B, :n_cvs]


# ----------------------------------------------------------------------------
# Synthetic parameters with the shapes implied by SchnetBasedVAE.__init__.
# ----------------------------------------------------------------------------
def init_params(key, n_atoms, n_rp, k_best, n_cvs):
    F = n_atoms * n_rp
    k2 = k_best // 2
    keys = jax.random.split(key, 8)

    # Standardize stats: per-atom, repeated over n_rp, flattened like the input.
    repre_mean = jax.random.normal(keys[0], (n_atoms,), jnp.float32) * 0.1
    repre_std = jax.random.uniform(keys[1], (n_atoms,), jnp.float32,
                                   minval=0.5, maxval=1.5)
    mean = jnp.repeat(repre_mean[:, None], n_rp, axis=1).reshape(1, F)
    std = jnp.repeat(repre_std[:, None], n_rp, axis=1).reshape(1, F)

    # IndexSelectLayer: k_best deterministic indices -> one-hot selection [F, K].
    idx = jnp.sort(jax.random.permutation(keys[2], F)[:k_best])
    sel = jnp.zeros((F, k_best), jnp.float32).at[idx, jnp.arange(k_best)].set(1.0)

    def dense(k, fan_in, fan_out):
        lim = math.sqrt(6.0 / (fan_in + fan_out))  # xavier_uniform (spk.nn.Dense)
        w = jax.random.uniform(k, (fan_in, fan_out), jnp.float32,
                               minval=-lim, maxval=lim)
        b = jnp.zeros((1, fan_out), jnp.float32)
        return w, b

    w1, b1 = dense(keys[3], k_best, k_best)
    w2, b2 = dense(keys[4], k_best, k2)
    wm, bm = dense(keys[5], k2, n_cvs)

    # standardize_cv: Standardize(torch.tensor([0.0]), torch.tensor([1.0]))
    shift = jnp.zeros((1, n_cvs), jnp.float32)
    scale = jnp.ones((1, n_cvs), jnp.float32)

    return (mean, std, sel, w1, b1, w2, b2, wm, bm, shift, scale)


# ----------------------------------------------------------------------------
# Pure-JAX reference mirroring the PyTorch forward semantics (unfused).
# ----------------------------------------------------------------------------
def reference_forward(repre, params):
    (mean, std, sel, w1, b1, w2, b2, wm, bm, shift, scale) = params
    B, A, R = repre.shape
    x = repre.reshape(B, A * R)
    x = (x - mean) / std
    x = jnp.matmul(x, sel, precision=_HI)
    x = _shifted_softplus(jnp.matmul(x, w1, precision=_HI) + b1)
    x = _shifted_softplus(jnp.matmul(x, w2, precision=_HI) + b2)
    m = jnp.matmul(x, wm, precision=_HI) + bm
    return (m - shift) / scale


if __name__ == "__main__":
    # Small shapes consistent with the module: batch=2, n_atoms=8, n_rp=16,
    # k_best=64 (args.n_indices), n_CVs=2.
    B, A, R = 2, 8, 16
    K_BEST, N_CVS = 64, 2

    key = jax.random.PRNGKey(0)
    k_in, k_par = jax.random.split(key)
    repre = jax.random.normal(k_in, (B, A, R), jnp.float32)
    params = init_params(k_par, A, R, K_BEST, N_CVS)

    cvs = schnet_vae_forward(repre, params)
    cvs = jax.block_until_ready(cvs)

    ref = reference_forward(repre, params)
    assert cvs.shape == (B, N_CVS), cvs.shape
    assert jnp.allclose(cvs, ref, atol=1e-4, rtol=1e-4), (cvs, ref)

    print("KERNEL_OK")
</pallas_src>

<mosaic_0001>
module attributes {stable_mosaic.version = 11 : i64} {
  func.func @vae_fused_kernel(%arg0: i32, %arg1: memref<8x128xf32, #tpu.memory_space<vmem>>, %arg2: memref<128x128xf32, #tpu.memory_space<vmem>>, %arg3: memref<128x128xf32, #tpu.memory_space<vmem>>, %arg4: memref<128x128xf32, #tpu.memory_space<vmem>>, %arg5: memref<3x128xf32, #tpu.memory_space<vmem>>, %arg6: memref<8x128xf32, #tpu.memory_space<vmem>>) attributes {dimension_semantics = [#tpu.dimension_semantics<parallel>], iteration_bounds = array<i64: 1>, scalar_prefetch = 0 : i64, scratch_operands = 0 : i64, tpu.core_type = #tpu.core_type<tc>, window_params = [{transform_indices = @transform_0, window_bounds = array<i64: 8, 128>}, {pipeline_mode = #tpu.pipeline_mode<synchronous>, transform_indices = @transform_1, window_bounds = array<i64: 128, 128>}, {pipeline_mode = #tpu.pipeline_mode<synchronous>, transform_indices = @transform_2, window_bounds = array<i64: 128, 128>}, {pipeline_mode = #tpu.pipeline_mode<synchronous>, transform_indices = @transform_3, window_bounds = array<i64: 128, 128>}, {pipeline_mode = #tpu.pipeline_mode<synchronous>, transform_indices = @transform_4, window_bounds = array<i64: 3, 128>}, {transform_indices = @transform_5, window_bounds = array<i64: 8, 128>}]} {
    %c0 = arith.constant 0 : index
    %c0_0 = arith.constant 0 : index
    %0 = vector.load %arg1[%c0, %c0_0] : memref<8x128xf32, #tpu.memory_space<vmem>>, vector<8x128xf32>
    %c0_1 = arith.constant 0 : index
    %c0_2 = arith.constant 0 : index
    %1 = vector.load %arg2[%c0_1, %c0_2] : memref<128x128xf32, #tpu.memory_space<vmem>>, vector<128x128xf32>
    %cst = arith.constant dense<0.000000e+00> : vector<8x128xf32>
    %2 = tpu.matmul %0, %1, %cst {dimension_numbers = #tpu.dot_dimension_numbers<[1], [0], [0], [1], [0, 0, 1, 1], [], []>} : vector<8x128xf32>, vector<128x128xf32>, vector<8x128xf32> -> vector<8x128xf32>
    %c0_3 = arith.constant 0 : index
    %c0_4 = arith.constant 0 : index
    %3 = vector.load %arg5[%c0_3, %c0_4] : memref<3x128xf32, #tpu.memory_space<vmem>>, vector<1x128xf32>
    %4 = vector.broadcast %3 : vector<1x128xf32> to vector<8x128xf32>
    %5 = arith.addf %2, %4 : vector<8x128xf32>
    %cst_5 = arith.constant 0.000000e+00 : f32
    %6 = vector.broadcast %cst_5 : f32 to vector<8x128xf32>
    %7 = arith.maximumf %5, %6 : vector<8x128xf32>
    %8 = vector.broadcast %cst_5 : f32 to vector<8x128xf32>
    %9 = arith.subf %5, %8 : vector<8x128xf32>
    %10 = arith.cmpf one, %9, %9 : vector<8x128xf32>
    %11 = vector.broadcast %cst_5 : f32 to vector<8x128xf32>
    %12 = arith.addf %5, %11 : vector<8x128xf32>
    %13 = math.absf %9 : vector<8x128xf32>
    %cst_6 = arith.constant 0.000000e+00 : f32
    %14 = vector.broadcast %cst_6 : f32 to vector<8x128xf32>
    %15 = arith.subf %14, %13 : vector<8x128xf32>
    %16 = math.exp %15 : vector<8x128xf32>
    %17 = math.log1p %16 : vector<8x128xf32>
    %18 = arith.addf %7, %17 : vector<8x128xf32>
    %19 = arith.select %10, %12, %18 : vector<8x128xi1>, vector<8x128xf32>
    %cst_7 = arith.constant 0.693147182 : f32
    %20 = vector.broadcast %cst_7 : f32 to vector<8x128xf32>
    %21 = arith.subf %19, %20 : vector<8x128xf32>
    %c0_8 = arith.constant 0 : index
    %c0_9 = arith.constant 0 : index
    %22 = vector.load %arg3[%c0_8, %c0_9] : memref<128x128xf32, #tpu.memory_space<vmem>>, vector<128x128xf32>
    %cst_10 = arith.constant dense<0.000000e+00> : vector<8x128xf32>
    %23 = tpu.matmul %21, %22, %cst_10 {dimension_numbers = #tpu.dot_dimension_numbers<[1], [0], [0], [1], [0, 0, 1, 1], [], []>} : vector<8x128xf32>, vector<128x128xf32>, vector<8x128xf32> -> vector<8x128xf32>
    %c1 = arith.constant 1 : index
    %c0_11 = arith.constant 0 : index
    %24 = vector.load %arg5[%c1, %c0_11] : memref<3x128xf32, #tpu.memory_space<vmem>>, vector<1x128xf32>
    %25 = vector.broadcast %24 : vector<1x128xf32> to vector<8x128xf32>
    %26 = arith.addf %23, %25 : vector<8x128xf32>
    %cst_12 = arith.constant 0.000000e+00 : f32
    %27 = vector.broadcast %cst_12 : f32 to vector<8x128xf32>
    %28 = arith.maximumf %26, %27 : vector<8x128xf32>
    %29 = vector.broadcast %cst_12 : f32 to vector<8x128xf32>
    %30 = arith.subf %26, %29 : vector<8x128xf32>
    %31 = arith.cmpf one, %30, %30 : vector<8x128xf32>
    %32 = vector.broadcast %cst_12 : f32 to vector<8x128xf32>
    %33 = arith.addf %26, %32 : vector<8x128xf32>
    %34 = math.absf %30 : vector<8x128xf32>
    %cst_13 = arith.constant 0.000000e+00 : f32
    %35 = vector.broadcast %cst_13 : f32 to vector<8x128xf32>
    %36 = arith.subf %35, %34 : vector<8x128xf32>
    %37 = math.exp %36 : vector<8x128xf32>
    %38 = math.log1p %37 : vector<8x128xf32>
    %39 = arith.addf %28, %38 : vector<8x128xf32>
    %40 = arith.select %31, %33, %39 : vector<8x128xi1>, vector<8x128xf32>
    %cst_14 = arith.constant 0.693147182 : f32
    %41 = vector.broadcast %cst_14 : f32 to vector<8x128xf32>
    %42 = arith.subf %40, %41 : vector<8x128xf32>
    %c0_15 = arith.constant 0 : index
    %c0_16 = arith.constant 0 : index
    %43 = vector.load %arg4[%c0_15, %c0_16] : memref<128x128xf32, #tpu.memory_space<vmem>>, vector<128x128xf32>
    %cst_17 = arith.constant dense<0.000000e+00> : vector<8x128xf32>
    %44 = tpu.matmul %42, %43, %cst_17 {dimension_numbers = #tpu.dot_dimension_numbers<[1], [0], [0], [1], [0, 0, 1, 1], [], []>} : vector<8x128xf32>, vector<128x128xf32>, vector<8x128xf32> -> vector<8x128xf32>
    %c2 = arith.constant 2 : index
    %c0_18 = arith.constant 0 : index
    %45 = vector.load %arg5[%c2, %c0_18] : memref<3x128xf32, #tpu.memory_space<vmem>>, vector<1x128xf32>
    %46 = vector.broadcast %45 : vector<1x128xf32> to vector<8x128xf32>
    %47 = arith.addf %44, %46 : vector<8x128xf32>
    %c0_19 = arith.constant 0 : index
    %c0_20 = arith.constant 0 : index
    %48 = vector.load %arg6[%c0_19, %c0_20] : memref<8x128xf32, #tpu.memory_space<vmem>>, vector<8x128xf32>
    tpu.vector_store %arg6[%c0_19, %c0_20], %47 {strides = array<i32>} : memref<8x128xf32, #tpu.memory_space<vmem>>, vector<8x128xf32>,
    return
  }
  func.func @transform_0(%arg0: i32) -> (i32, i32) {
    %c0_i32 = arith.constant 0 : i32
    %c0_i32_0 = arith.constant 0 : i32
    return %arg0, %c0_i32 : i32, i32
  }
  func.func @transform_1(%arg0: i32) -> (i32, i32) {
    %c0_i32 = arith.constant 0 : i32
    %c0_i32_0 = arith.constant 0 : i32
    %c0_i32_1 = arith.constant 0 : i32
    return %c0_i32, %c0_i32_0 : i32, i32
  }
  func.func @transform_2(%arg0: i32) -> (i32, i32) {
    %c0_i32 = arith.constant 0 : i32
    %c0_i32_0 = arith.constant 0 : i32
    %c0_i32_1 = arith.constant 0 : i32
    return %c0_i32, %c0_i32_0 : i32, i32
  }
  func.func @transform_3(%arg0: i32) -> (i32, i32) {
    %c0_i32 = arith.constant 0 : i32
    %c0_i32_0 = arith.constant 0 : i32
    %c0_i32_1 = arith.constant 0 : i32
    return %c0_i32, %c0_i32_0 : i32, i32
  }
  func.func @transform_4(%arg0: i32) -> (i32, i32) {
    %c0_i32 = arith.constant 0 : i32
    %c0_i32_0 = arith.constant 0 : i32
    %c0_i32_1 = arith.constant 0 : i32
    return %c0_i32, %c0_i32_0 : i32, i32
  }
  func.func @transform_5(%arg0: i32) -> (i32, i32) {
    %c0_i32 = arith.constant 0 : i32
    %c0_i32_0 = arith.constant 0 : i32
    return %arg0, %c0_i32 : i32, i32
  }
}

</mosaic_0001>

<bundles_post_ra>
// kernel: tpu_custom_call.1
= control target key start
LH: loop header
LB: loop body
LE: loop exit
PB: predicated region body
PF: predicated region fallthrough
CT: control target
= control target key end

     0   :  { %10 = vsyncpa [#allocation3], 0  ;;  %s497_s0 = inlined_call_operand.hbm [shape: f32[8,128], index: 0, kind: input, shape index: {}]   ;;  %s498_s1 = inlined_call_operand.hbm [shape: f32[128,128], index: 1, kind: input, shape index: {}]   ;;  %s499_s2 = inlined_call_operand.hbm [shape: f32[128,128], index: 2, kind: input, shape index: {}]   ;;  %s500_s3 = inlined_call_operand.hbm [shape: f32[128,128], index: 3, kind: input, shape index: {}]   ;;  %s501_s4 = inlined_call_operand.hbm [shape: f32[3,128], index: 4, kind: input, shape index: {}]   ;;  %s502_s5 = inlined_call_operand.hbm [shape: f32[8,128], index: 5, kind: output, shape index: {}]  }
   0x1   :  { %11 = vsyncpa [#allocation6], 0 }
   0x2   :  { %12 = vsyncpa [#allocation9], 0  ;;  %s29_s20 = sshll.u32 %s498_s1, 4  ;;  %s30_s20 = int_to_ptr.hbm [resolvable:$true] %s29_s20 }
   0x3   :  { %13 = vsyncpa [#allocation4], 0  ;;  %s441_s21 = smov [#allocation5]   ;;  %s55_s25 = sshll.u32 %s500_s3, 4  ;;  %s56_s25 = int_to_ptr.hbm [resolvable:$true] %s55_s25 }
   0x4   :  { %s31_s22 = sshll.u32 %s441_s21, 4  ;;  %s442_s26 = smov 128   ;;  %s32_s22 = int_to_ptr.vmem [resolvable:$true] %s31_s22 }
   0x5   :  { %s443_s27 = smov 8   ;;  %s444_s28 = smov [#allocation8]  }
   0x6   :  { %37 = dma.hbm_to_vmem [thread:$0]  %s30_s20, 2048, %s32_s22, [#allocation6], %s442_s26, %s442_s26, %s443_s27  }
   0x7   :  { %s57_s29 = sshll.u32 %s444_s28, 4  ;;  %s19_s7 = sshll.u32 %s497_s0, 4  ;;  %s58_s29 = int_to_ptr.vmem [resolvable:$true] %s57_s29  ;;  %s20_s7 = int_to_ptr.hbm [resolvable:$true] %s19_s7 }
   0x8   :  { %63 = dma.hbm_to_vmem [thread:$0]  %s56_s25, 2048, %s58_s29, [#allocation9], %s442_s26, %s442_s26, %s443_s27  }
   0x9   :  { %s42_s9 = sshll.u32 %s499_s2, 4  ;;  %s445_s10 = smov [#allocation2]   ;;  %s43_s9 = int_to_ptr.hbm [resolvable:$true] %s42_s9 }
   0xa   :  { %s21_s11 = sshll.u32 %s445_s10, 4  ;;  %s446_s3 = smov [#allocation7]   ;;  %s22_s11 = int_to_ptr.vmem [resolvable:$true] %s21_s11 }
   0xb   :  { %24 = dma.hbm_to_vmem [thread:$0]  %s20_s7, 128, %s22_s11, [#allocation3]  }
   0xc   :  { %s44_s12 = sshll.u32 %s446_s3, 4  ;;  %s69_s15 = sshll.u32 %s501_s4, 4  ;;  %s45_s12 = int_to_ptr.vmem [resolvable:$true] %s44_s12  ;;  %s70_s15 = int_to_ptr.hbm [resolvable:$true] %s69_s15 }
   0xd   :  { %50 = dma.hbm_to_vmem [thread:$0]  %s43_s9, 2048, %s45_s12, [#allocation6], %s442_s26, %s442_s26, %s443_s27  }
   0xe   :  { %s447_s0 = smov [#allocation10]  }
   0xf   :  { %s71_s16 = sshll.u32 %s447_s0, 4  ;;  %s72_s16 = int_to_ptr.vmem [resolvable:$true] %s71_s16 }
  0x10   :  { %74 = dma.hbm_to_vmem [thread:$0]  %s70_s15, 64, %s72_s16, [#allocation9]  }
  0x11   :  { %433 = dma.done.wait [#allocation3], 128  }
  0x12   :  { %434 = vsyncadd [#allocation3], 4294967168 }
  0x13   :  { %435 = dma.done.wait [#allocation6], 4096  }
  0x14   :  { %436 = vsyncadd [#allocation6], 4294963200 }
  0x15   :  { %437 = dma.done.wait [#allocation9], 2112  }
  0x16   :  { %438 = vsyncadd [#allocation9], 4294965184  ;;  %v111_v0 = vld [vmem:[#allocation5 + $0x78] sm:$0xff]  ;;  %v110_v1 = vld [vmem:[#allocation5 + $0x70] sm:$0xff]  ;;  %s448_s2 = smov [#allocation11]   ;;  %s256_s19 = sshll.u32 %s502_s5, 4  ;;  %s257_s19 = int_to_ptr.hbm [resolvable:$true] %s256_s19 }
  0x17   :  { %114 = vmatpush.msra.mxu0 %v111_v0  ;;  %v109_v2 = vld [vmem:[#allocation5 + $0x68] sm:$0xff]  ;;  %v108_v3 = vld [vmem:[#allocation5 + $0x60] sm:$0xff]  ;;  %v107_v4 = vld [vmem:[#allocation5 + $0x58] sm:$0xff]  ;;  %s254_s4 = sshll.u32 %s448_s2, 4  ;;  %s255_s4 = int_to_ptr.vmem [resolvable:$true] %s254_s4 }
  0x18   :  { %v106_v5 = vld [vmem:[#allocation5 + $0x50] sm:$0xff]  ;;  %v105_v6 = vld [vmem:[#allocation5 + $0x48] sm:$0xff]  ;;  %v104_v7 = vld [vmem:[#allocation5 + $0x40] sm:$0xff] }
  0x19   :  { %115 = vmatpush.msra.mxu0 %v110_v1  ;;  %v103_v8 = vld [vmem:[#allocation5 + $0x38] sm:$0xff]  ;;  %v102_v9 = vld [vmem:[#allocation5 + $0x30] sm:$0xff]  ;;  %v101_v10 = vld [vmem:[#allocation5 + $0x28] sm:$0xff] }
  0x1a   :  { %v100_v11 = vld [vmem:[#allocation5 + $0x20] sm:$0xff]  ;;  %v99_v12 = vld [vmem:[#allocation5 + $0x18] sm:$0xff]  ;;  %v98_v13 = vld [vmem:[#allocation5 + $0x10] sm:$0xff] }
  0x1b   :  { %116 = vmatpush.msra.mxu0 %v109_v2  ;;  %v97_v14 = vld [vmem:[#allocation5 + $0x8] sm:$0xff]  ;;  %v96_v15 = vld [vmem:[#allocation5] sm:$0xff]  ;;  %v95_v16 = vld [vmem:[#allocation2] sm:$0xff] }
  0x1c   :  { %v168_v17 = vld [vmem:[#allocation7 + $0x78] sm:$0xff]  ;;  %v167_v18 = vld [vmem:[#allocation7 + $0x70] sm:$0xff]  ;;  %v166_v19 = vld [vmem:[#allocation7 + $0x68] sm:$0xff] }
  0x1d   :  { %117 = vmatpush.msra.mxu0 %v108_v3  ;;  %171 = vmatpush.msra.mxu1 %v168_v17  ;;  %v165_v20 = vld [vmem:[#allocation7 + $0x60] sm:$0xff]  ;;  %v164_v21 = vld [vmem:[#allocation7 + $0x58] sm:$0xff]  ;;  %v163_v22 = vld [vmem:[#allocation7 + $0x50] sm:$0xff] }
  0x1e   :  { %v162_v23 = vld [vmem:[#allocation7 + $0x48] sm:$0xff]  ;;  %v161_v24 = vld [vmem:[#allocation7 + $0x40] sm:$0xff]  ;;  %v160_v25 = vld [vmem:[#allocation7 + $0x38] sm:$0xff] }
  0x1f   :  { %118 = vmatpush.msra.mxu0 %v107_v4  ;;  %172 = vmatpush.msra.mxu1 %v167_v18  ;;  %v159_v26 = vld [vmem:[#allocation7 + $0x30] sm:$0xff]  ;;  %v158_v27 = vld [vmem:[#allocation7 + $0x28] sm:$0xff]  ;;  %v157_v28 = vld [vmem:[#allocation7 + $0x20] sm:$0xff] }
  0x20   :  { %v156_v29 = vld [vmem:[#allocation7 + $0x18] sm:$0xff]  ;;  %v155_v30 = vld [vmem:[#allocation7 + $0x10] sm:$0xff]  ;;  %v154_v31 = vld [vmem:[#allocation7 + $0x8] sm:$0xff] }
  0x21   :  { %119 = vmatpush.msra.mxu0 %v106_v5  ;;  %173 = vmatpush.msra.mxu1 %v166_v19  ;;  %v278_v32 = vld [vmem:[#allocation10] ss:$0 sm:$0xff]  ;;  %v225_v52 = vld [vmem:[#allocation8 + $0x78] sm:$0xff]  ;;  %v224_v53 = vld [vmem:[#allocation8 + $0x70] sm:$0xff] }
  0x22   :  { %v153_v33 = vld [vmem:[#allocation7] sm:$0xff]  ;;  %228 = vmatpush.msra.mxu2 %v225_v52  ;;  %v223_v54 = vld [vmem:[#allocation8 + $0x68] sm:$0xff]  ;;  %v221_v56 = vld [vmem:[#allocation8 + $0x58] sm:$0xff] }
  0x23   :  { %120 = vmatpush.msra.mxu0 %v105_v6  ;;  %174 = vmatpush.msra.mxu1 %v165_v20  ;;  %v222_v55 = vld [vmem:[#allocation8 + $0x60] sm:$0xff]  ;;  %v220_v57 = vld [vmem:[#allocation8 + $0x50] sm:$0xff]  ;;  %v219_v58 = vld [vmem:[#allocation8 + $0x48] sm:$0xff] }
  0x24   :  { %229 = vmatpush.msra.mxu2 %v224_v53  ;;  %v218_v59 = vld [vmem:[#allocation8 + $0x40] sm:$0xff]  ;;  %v217_v60 = vld [vmem:[#allocation8 + $0x38] sm:$0xff]  ;;  %v216_v61 = vld [vmem:[#allocation8 + $0x30] sm:$0xff] }
  0x25   :  { %121 = vmatpush.msra.mxu0 %v104_v7  ;;  %175 = vmatpush.msra.mxu1 %v164_v21  ;;  %v215_v62 = vld [vmem:[#allocation8 + $0x28] sm:$0xff]  ;;  %v214_v63 = vld [vmem:[#allocation8 + $0x20] sm:$0xff]  ;;  %v213_v0 = vld [vmem:[#allocation8 + $0x18] sm:$0xff] }
  0x26   :  { %230 = vmatpush.msra.mxu2 %v223_v54  ;;  %v212_v1 = vld [vmem:[#allocation8 + $0x10] sm:$0xff]  ;;  %v211_v2 = vld [vmem:[#allocation8 + $0x8] sm:$0xff]  ;;  %v279_v3 = vld [vmem:[#allocation10 + $0x1] ss:$0 sm:$0xff] }
  0x27   :  { %122 = vmatpush.msra.mxu0 %v103_v8  ;;  %176 = vmatpush.msra.mxu1 %v163_v22  ;;  %v210_v4 = vld [vmem:[#allocation8] sm:$0xff] }
  0x28   :  { %231 = vmatpush.msra.mxu2 %v222_v55 }
  0x29   :  { %123 = vmatpush.msra.mxu0 %v102_v9  ;;  %177 = vmatpush.msra.mxu1 %v162_v23  ;;  %v280_v23 = vld [vmem:[#allocation10 + $0x2] ss:$0 sm:$0xff] }
  0x2a   :  { %232 = vmatpush.msra.mxu2 %v221_v56 }
  0x2b   :  { %124 = vmatpush.msra.mxu0 %v101_v10  ;;  %178 = vmatpush.msra.mxu1 %v161_v24 }
  0x2c   :  { %233 = vmatpush.msra.mxu2 %v220_v57 }
  0x2d   :  { %125 = vmatpush.msra.mxu0 %v100_v11  ;;  %179 = vmatpush.msra.mxu1 %v160_v25 }
  0x2e   :  { %234 = vmatpush.msra.mxu2 %v219_v58 }
  0x2f   :  { %126 = vmatpush.msra.mxu0 %v99_v12  ;;  %180 = vmatpush.msra.mxu1 %v159_v26 }
  0x30   :  { %235 = vmatpush.msra.mxu2 %v218_v59 }
  0x31   :  { %127 = vmatpush.msra.mxu0 %v98_v13  ;;  %181 = vmatpush.msra.mxu1 %v158_v27 }
  0x32   :  { %236 = vmatpush.msra.mxu2 %v217_v60 }
  0x33   :  { %128 = vmatpush.msra.mxu0 %v97_v14  ;;  %182 = vmatpush.msra.mxu1 %v157_v28 }
  0x34   :  { %237 = vmatpush.msra.mxu2 %v216_v61 }
  0x35   :  { %129 = vmatpush.msra.mxu0 %v96_v15  ;;  %183 = vmatpush.msra.mxu1 %v156_v29 }
  0x36   :  { %130 = vmatmul.f32.vlgmr.msra.gmra.mxu0 %v95_v16  ;;  %238 = vmatpush.msra.mxu2 %v215_v62 }
  0x37   :  { %184 = vmatpush.msra.mxu1 %v155_v30 }
  0x38   :  { %239 = vmatpush.msra.mxu2 %v214_v63 }
  0x39   :  { %185 = vmatpush.msra.mxu1 %v154_v31 }
  0x3a   :  { %240 = vmatpush.msra.mxu2 %v213_v0 }
  0x3b   :  { %186 = vmatpush.msra.mxu1 %v153_v33 }
  0x3c   :  { %241 = vmatpush.msra.mxu2 %v212_v1 }
  0x3e   :  { %242 = vmatpush.msra.mxu2 %v211_v2 }
  0x40   :  { %243 = vmatpush.msra.mxu2 %v210_v4 }
  0xb3   :  { %v131_v34 = vpop.f32.mrf.mxu0 }
  0xb4   :  { %v132_v35 = vadd.f32 %v278_v32, %v131_v34 }
  0xb6   :  { %v137_v36 = vand.u32 2147483647, %v132_v35  ;;  %v134_v47 = vmax.f32 %v132_v35, 0.0  ;;  %vm135_vm1 = vcmp.ne.f32.partialorder %v132_v35, %v132_v35 }
  0xb8   :  { %v138_v37 = vsub.f32 0.0, %v137_v36 }
  0xba   :  { %v139_v38 = vmul.f32 1.442695, %v138_v37 }
  0xbc   :  { %281 = vpow2.f32 %v139_v38 }
  0xc2   :  { %v282_v39 = vpop.eup %281 }
  0xc3   :  { %v141_v40 = vadd.f32 1.0, %v282_v39  ;;  %v144_v41 = vmul.f32 -0.5, %v282_v39  ;;  %v147_v43 = vand.u32 2147483647, %v282_v39 }
  0xc5   :  { %283 = vlog2.f32 %v141_v40  ;;  %v145_v42 = vadd.f32 1.0, %v144_v41  ;;  %vm148_vm0 = vcmp.lt.f32.partialorder %v147_v43, 0.0004427343 }
  0xc7   :  { %v146_v46 = vmul.f32 %v282_v39, %v145_v42 }
  0xcb   :  { %v284_v44 = vpop.eup %283 }
  0xcc   :  { %v143_v45 = vmul.f32 0.6931472, %v284_v44 }
  0xce   :  { %v149_v48 = vsel %vm148_vm0, %v146_v46, %v143_v45 }
  0xcf   :  { %v150_v49 = vadd.f32 %v149_v48, %v134_v47 }
  0xd1   :  { %v151_v50 = vsel %vm135_vm1, %v132_v35, %v150_v49 }
  0xd2   :  { %v268_v51 = vadd.f32 -0.6931472, %v151_v50 }
  0xd4   :  { %187 = vmatmul.f32.vlgmr.msra.gmra.mxu1 %v268_v51 }
 0x151   :  { %v188_v5 = vpop.f32.mrf.mxu1 }
 0x152   :  { %v189_v6 = vadd.f32 %v279_v3, %v188_v5 }
 0x154   :  { %v194_v7 = vand.u32 2147483647, %v189_v6  ;;  %v191_v18 = vmax.f32 %v189_v6, 0.0  ;;  %vm192_vm3 = vcmp.ne.f32.partialorder %v189_v6, %v189_v6 }
 0x156   :  { %v195_v8 = vsub.f32 0.0, %v194_v7 }
 0x158   :  { %v196_v9 = vmul.f32 1.442695, %v195_v8 }
 0x15a   :  { %285 = vpow2.f32 %v196_v9 }
 0x160   :  { %v286_v10 = vpop.eup %285 }
 0x161   :  { %v198_v11 = vadd.f32 1.0, %v286_v10  ;;  %v201_v12 = vmul.f32 -0.5, %v286_v10  ;;  %v204_v14 = vand.u32 2147483647, %v286_v10 }
 0x163   :  { %287 = vlog2.f32 %v198_v11  ;;  %v202_v13 = vadd.f32 1.0, %v201_v12  ;;  %vm205_vm2 = vcmp.lt.f32.partialorder %v204_v14, 0.0004427343 }
 0x165   :  { %v203_v17 = vmul.f32 %v286_v10, %v202_v13 }
 0x169   :  { %v288_v15 = vpop.eup %287 }
 0x16a   :  { %v200_v16 = vmul.f32 0.6931472, %v288_v15 }
 0x16c   :  { %v206_v19 = vsel %vm205_vm2, %v203_v17, %v200_v16 }
 0x16d   :  { %v207_v20 = vadd.f32 %v206_v19, %v191_v18 }
 0x16f   :  { %v208_v21 = vsel %vm192_vm3, %v189_v6, %v207_v20 }
 0x170   :  { %v269_v22 = vadd.f32 -0.6931472, %v208_v21 }
 0x172   :  { %244 = vmatmul.f32.vlgmr.msra.gmra.mxu2 %v269_v22 }
 0x1f5   :  { %v245_v24 = vpop.f32.mrf.mxu2 }
 0x1f6   :  { %v246_v25 = vadd.f32 %v280_v23, %v245_v24 }
 0x1f8   :  { %248 = vst [vmem:[#allocation11] sm:$0xff] %v246_v25 }
 0x1f9   :  { %259 = dma.vmem_to_hbm [thread:$0]  %s255_s4, 128, %s257_s19, [#allocation4]  }
 0x1fa   :  { %439 = dma.done.wait [#allocation4], 128  }
 0x1fb   :  { %440 = vsyncadd [#allocation4], 4294967168 }
 0x1fc   :  { %264 = vsyncpa [#allocation3], 1 }
 0x1fd   :  { %265 = vsyncpa [#allocation6], 1 }
 0x1fe   :  { %266 = vsyncpa [#allocation9], 1 }
 0x1ff   :  { %267 = vsyncpa [#allocation4], 1 }

</bundles_post_ra>
